<compile_context>
chip_gen: v7x
topology: tpu7x:2x2x1
jax: 0.10.0
libtpu: 0.0.40
codegen_flags: <defaults>
</compile_context>

<pallas_src>
import math
import functools

import jax
import jax.numpy as jnp
from jax.experimental import pallas as pl
from jax.experimental.pallas import tpu as pltpu


# ----------------------------- sin/cos table --------------------------------

def make_sincos_table(max_len: int, d_model: int, dtype=jnp.float32):
    """Matches the PyTorch buffer: pe[:, 0, 0::2] = sin, pe[:, 0, 1::2] = cos.

    Built once at module init, already in the activation dtype (no per-call
    cast on the hot path).  Returned shape is (max_len, d_model).
    """
    position = jnp.arange(max_len, dtype=jnp.float32)[:, None]                 # (L, 1)
    div_term = jnp.exp(jnp.arange(0, d_model, 2, dtype=jnp.float32)
                       * (-math.log(10000.0) / d_model))                       # (D/2,)
    ang = position * div_term                                                  # (L, D/2)
    pe = jnp.zeros((max_len, d_model), dtype=jnp.float32)
    pe = pe.at[:, 0::2].set(jnp.sin(ang))
    pe = pe.at[:, 1::2].set(jnp.cos(ang))
    return pe.astype(dtype)


# ----------------------------- tile planning --------------------------------

_TARGET_BLOCK_BYTES = 6 << 20   # ~6 MiB per x/out block (review: 4-8 MiB)
_MIN_SEQ_STEPS = 8              # aim for >= ~8 seq grid steps on long sequences


def _round_up(x: int, m: int) -> int:
    return ((x + m - 1) // m) * m


def _vmem_capacity_bytes() -> int:
    """Per-core VMEM capacity; conservative 64 MiB (v7x) fallback."""
    try:
        info = pltpu.get_tpu_info()
        cap = getattr(info, "vmem_capacity_bytes", None)
        if cap:
            return int(cap)
    except Exception:
        pass
    return 64 << 20


def _plan_tiles(S: int, N: int, D: int, itemsize: int, usable_vmem: int):
    """Pick (seq_tile, batch_tile, sublane_multiple).

    Working set budgeted as 2x x-block + 2x out-block + 2x pe-block
    (default 2-deep BlockSpec pipelining on every operand).
    """
    sub = 8 * (4 // itemsize) if itemsize in (1, 2, 4) else 8   # sublane multiple
    row_bytes = D * itemsize

    # Batch tile: full N unless even a minimal (sub-row) block blows the budget.
    tn = N
    if sub * row_bytes * (4 * N + 2) > usable_vmem and N > sub:
        tn_budget = (usable_vmem // (sub * row_bytes) - 2) // 4
        tn = min(N, max(sub, (tn_budget // sub) * sub))

    # Sequence tile: byte budget governs; no artificial row cap.
    per_row = row_bytes * (4 * tn + 2)
    rows = min(usable_vmem // per_row,
               _TARGET_BLOCK_BYTES // max(1, tn * row_bytes))
    rows = max(sub, (rows // sub) * sub)
    rows = min(rows, _round_up(S, sub))
    # Keep >= ~_MIN_SEQ_STEPS grid steps on long sequences so both v7x
    # TensorCores get pipelined work (prologue/epilogue DMAs overlap).
    if S > _MIN_SEQ_STEPS * sub:
        rows = min(rows, max(sub, _round_up(pl.cdiv(S, _MIN_SEQ_STEPS), sub)))
    return int(rows), int(tn), int(sub)


# ------------------------------- kernels -------------------------------------

def _add_pe_folded_kernel(x_ref, pe_ref, o_ref, *, n_batch):
    # x_ref/o_ref: (ts, N*D) lane/sublane-dense tiles; pe_ref: (ts, D).
    pe = pe_ref[...]
    if n_batch > 1:
        # Lane-concatenate N copies of each pe row -> matches the folded x row
        # layout [n=0 | n=1 | ...].  Compute is hidden under the HBM DMAs.
        pe = jnp.concatenate([pe] * n_batch, axis=-1)
    o_ref[...] = (x_ref[...] + pe).astype(o_ref.dtype)


def _add_pe_3d_kernel(x_ref, pe_ref, o_ref):
    # x_ref/o_ref: (ts, tn, D); pe_ref: (ts, D) broadcast over the batch dim.
    o_ref[...] = (x_ref[...] + pe_ref[...][:, None, :]).astype(o_ref.dtype)


# ------------------------------- wrapper --------------------------------------

def positional_encoding_sincos(x, pe_table, *, donate_x: bool = False):
    """out = x + pe_table[:S] broadcast over the batch axis.

    x: (S, N, D) seq-first; pe_table: (max_len, D) built by make_sincos_table.
    donate_x=True adds input_output_aliases={0: 0} (use when x is dead after
    this op, ideally under jit with donate_argnums).
    """
    S, N, D = x.shape
    max_len, d_model = pe_table.shape
    if d_model != D:
        raise ValueError(f"d_model mismatch: x has {D}, pe table has {d_model}")
    if S > max_len:
        raise ValueError(f"sequence length {S} exceeds max_len {max_len}")
    if pe_table.dtype != x.dtype:
        # Fallback only; prefer building the table in the activation dtype at init.
        pe_table = pe_table.astype(x.dtype)

    itemsize = jnp.dtype(x.dtype).itemsize
    vmem_cap = _vmem_capacity_bytes()
    vmem_limit = int((min(vmem_cap, 128 << 20) * 3) // 4)   # 96 MiB v5e/v6e, 48 MiB v7x
    usable = vmem_limit // 2                                 # headroom for Mosaic scratch
    ts, tn, sub = _plan_tiles(S, N, D, itemsize, usable)

    cost = pl.CostEstimate(
        flops=S * N * D,
        transcendentals=0,
        bytes_accessed=(2 * S * N * D + S * D) * itemsize,
    )
    io_alias = {0: 0} if donate_x else {}
    cparams = lambda sem: pltpu.CompilerParams(
        dimension_semantics=sem, vmem_limit_bytes=vmem_limit)

    # Folded path: sublane/lane-dense blocks when N is small and N*D is a
    # multiple of 128 (free reshape of a contiguous array; no extra HBM pass).
    folded = ((N * D) % 128 == 0 and N <= 16
              and sub * (4 * N + 2) * D * itemsize <= usable)

    if folded:
        nf = N * D
        x2 = x.reshape(S, nf)
        out2 = pl.pallas_call(
            functools.partial(_add_pe_folded_kernel, n_batch=N),
            out_shape=jax.ShapeDtypeStruct((S, nf), x.dtype),
            grid=(pl.cdiv(S, ts),),
            in_specs=[
                pl.BlockSpec((ts, nf), lambda i: (i, 0)),
                pl.BlockSpec((ts, D), lambda i: (i, 0)),   # rows straight from full table
            ],
            out_specs=pl.BlockSpec((ts, nf), lambda i: (i, 0)),
            compiler_params=cparams(("parallel",)),
            cost_estimate=cost,
            input_output_aliases=io_alias,
        )(x2, pe_table)
        return out2.reshape(S, N, D)

    # General path: (ts, tn, D) blocks; batch axis tiled only when needed.
    grid = (pl.cdiv(S, ts), pl.cdiv(N, tn))
    return pl.pallas_call(
        _add_pe_3d_kernel,
        out_shape=jax.ShapeDtypeStruct((S, N, D), x.dtype),
        grid=grid,
        in_specs=[
            pl.BlockSpec((ts, tn, D), lambda i, j: (i, j, 0)),
            pl.BlockSpec((ts, D), lambda i, j: (i, 0)),
        ],
        out_specs=pl.BlockSpec((ts, tn, D), lambda i, j: (i, j, 0)),
        compiler_params=cparams(("parallel", "parallel")),
        cost_estimate=cost,
        input_output_aliases=io_alias,
    )(x, pe_table)


# --------------------------------- demo ---------------------------------------

if __name__ == "__main__":
    key = jax.random.PRNGKey(0)
    k1, k2, k3 = jax.random.split(key, 3)
    MAX_LEN = 5000  # module default

    # TODO(synk): dropout(p=0.1) is modeled in eval mode (identity); training-mode
    # stochastic dropout would use pltpu.prng_seed + pltpu.stateful_bernoulli.

    # Case 1: small module-like shape (general 3-D path, full-extent trailing dims).
    S1, N1, D1 = 8, 2, 32
    pe1 = make_sincos_table(MAX_LEN, D1, dtype=jnp.float32)
    x1 = jax.random.normal(k1, (S1, N1, D1), dtype=jnp.float32)
    out1 = jax.block_until_ready(positional_encoding_sincos(x1, pe1))
    ref1 = x1 + pe1[:S1][:, None, :]
    assert out1.shape == (S1, N1, D1)
    assert jnp.allclose(out1, ref1, atol=1e-6), "case 1 mismatch vs reference"

    # Case 2: lane/sublane-dense folded path, multi-step pipelined grid,
    # production-style jit with donated input (x2 is dead after the call).
    S2, N2, D2 = 128, 4, 128
    pe2 = make_sincos_table(MAX_LEN, D2, dtype=jnp.float32)
    x2 = jax.random.normal(k2, (S2, N2, D2), dtype=jnp.float32)
    ref2 = x2 + pe2[:S2][:, None, :]
    fwd2 = jax.jit(lambda a, t: positional_encoding_sincos(a, t, donate_x=True),
                   donate_argnums=(0,))
    out2 = jax.block_until_ready(fwd2(x2, pe2))
    assert out2.shape == (S2, N2, D2)
    assert jnp.allclose(out2, ref2, atol=1e-6), "case 2 mismatch vs reference"

    # Case 3: S < 8 (partial / masked edge block) with a bf16 table prebuilt
    # in the activation dtype.
    S3, N3, D3 = 5, 2, 128
    pe3 = make_sincos_table(MAX_LEN, D3, dtype=jnp.bfloat16)
    x3 = jax.random.normal(k3, (S3, N3, D3), dtype=jnp.bfloat16)
    out3 = jax.block_until_ready(positional_encoding_sincos(x3, pe3))
    ref3 = x3 + pe3[:S3][:, None, :]
    assert out3.shape == (S3, N3, D3)
    assert jnp.allclose(out3.astype(jnp.float32), ref3.astype(jnp.float32),
                        atol=2e-2), "case 3 mismatch vs reference"

    print("KERNEL_OK")
</pallas_src>

<mosaic_0001>
module attributes {stable_mosaic.version = 11 : i64} {
  func.func @_add_pe_3d_kernel(%arg0: i32, %arg1: i32, %arg2: memref<8x2x32xf32, #tpu.memory_space<vmem>>, %arg3: memref<8x32xf32, #tpu.memory_space<vmem>>, %arg4: memref<8x2x32xf32, #tpu.memory_space<vmem>>) attributes {dimension_semantics = [#tpu.dimension_semantics<parallel>, #tpu.dimension_semantics<parallel>], iteration_bounds = array<i64: 1, 1>, scalar_prefetch = 0 : i64, scratch_operands = 0 : i64, tpu.core_type = #tpu.core_type<tc>, window_params = [{transform_indices = @transform_0, window_bounds = array<i64: 8, 2, 32>}, {transform_indices = @transform_1, window_bounds = array<i64: 8, 32>}, {transform_indices = @transform_2, window_bounds = array<i64: 8, 2, 32>}]} {
    %c0 = arith.constant 0 : index
    %c0_0 = arith.constant 0 : index
    %c0_1 = arith.constant 0 : index
    %0 = vector.load %arg2[%c0, %c0_0, %c0_1] : memref<8x2x32xf32, #tpu.memory_space<vmem>>, vector<8x2x32xf32>
    %c0_2 = arith.constant 0 : index
    %c0_3 = arith.constant 0 : index
    %1 = vector.load %arg3[%c0_2, %c0_3] : memref<8x32xf32, #tpu.memory_space<vmem>>, vector<8x32xf32>
    %2 = vector.shape_cast %1 : vector<8x32xf32> to vector<8x1x32xf32>
    %3 = vector.broadcast %2 : vector<8x1x32xf32> to vector<8x2x32xf32>
    %4 = arith.addf %0, %3 : vector<8x2x32xf32>
    %c0_4 = arith.constant 0 : index
    %c0_5 = arith.constant 0 : index
    %c0_6 = arith.constant 0 : index
    %5 = vector.load %arg4[%c0_4, %c0_5, %c0_6] : memref<8x2x32xf32, #tpu.memory_space<vmem>>, vector<8x2x32xf32>
    tpu.vector_store %arg4[%c0_4, %c0_5, %c0_6], %4 {strides = array<i32>} : memref<8x2x32xf32, #tpu.memory_space<vmem>>, vector<8x2x32xf32>,
    return
  }
  func.func @transform_0(%arg0: i32, %arg1: i32) -> (i32, i32, i32) {
    %c0_i32 = arith.constant 0 : i32
    %c0_i32_0 = arith.constant 0 : i32
    return %arg0, %arg1, %c0_i32 : i32, i32, i32
  }
  func.func @transform_1(%arg0: i32, %arg1: i32) -> (i32, i32) {
    %c0_i32 = arith.constant 0 : i32
    %c0_i32_0 = arith.constant 0 : i32
    return %arg0, %c0_i32 : i32, i32
  }
  func.func @transform_2(%arg0: i32, %arg1: i32) -> (i32, i32, i32) {
    %c0_i32 = arith.constant 0 : i32
    %c0_i32_0 = arith.constant 0 : i32
    return %arg0, %arg1, %c0_i32 : i32, i32, i32
  }
}

</mosaic_0001>

<bundles_post_ra>
// kernel: tpu_custom_call.1
= control target key start
LH: loop header
LB: loop body
LE: loop exit
PB: predicated region body
PF: predicated region fallthrough
CT: control target
= control target key end

     0   :  { %v26_v1 = vlaneseq  ;;  %v172_v2 = vmov 1966171168   ;;  %s238_s0 = inlined_call_operand.vmem [shape: f32[8,2,32], index: 0, kind: input, shape index: {}]   ;;  %s239_s1 = inlined_call_operand.vmem [shape: f32[5000,32], index: 1, kind: input, shape index: {}]   ;;  %s240_s2 = inlined_call_operand.hbm [shape: f32[8,2,32], index: 2, kind: output, shape index: {}]  }
   0x1   :  { %v20_v0 = vld [vmem:[%s239_s1] sm:$0xff]  ;;  %v24_v3 = vunpack.c.l.s4 %v172_v2 }
   0x2   :  { %v27_v4 = vshrl.u32 %v26_v1, 7  ;;  %v22_v6 = vcombine.high %v20_v0, %v20_v0 }
   0x3   :  { %v25_v5 = vunpack.c.0.s8 %v24_v3 }
   0x4   :  { %7 = vsyncpa [#allocation3], 0  ;;  %v73_v9 = vsub.s32 0, %v27_v4  ;;  %v12_v15 = vld [vmem:[%s238_s0] sm:$0x3]  ;;  %vm119_vm0 = vcmask 254976  }
   0x5   :  { %v28_v7 = vsub.s32 %v25_v5, %v27_v4  ;;  %v16_v19 = vld [vmem:[%s238_s0 + $0x8] sm:$0x3]  ;;  %v13_v21 = vld [vmem:[%s238_s0 + $0x2] sm:$0x3]  ;;  %v14_v22 = vld [vmem:[%s238_s0 + $0x4] sm:$0x3] }
   0x6   :  { %v17_v29 = vld [vmem:[%s238_s0 + $0xa] sm:$0x3]  ;;  %v18_v30 = vld [vmem:[%s238_s0 + $0xc] sm:$0x3]  ;;  %v15_v31 = vld [vmem:[%s238_s0 + $0x6] sm:$0x3] }
   0x7   :  { %v29_v8 = vrot.slane %v20_v0, %v28_v7  ;;  %v36_v10 = vrot.slane %v22_v6, %v28_v7  ;;  %v19_v39 = vld [vmem:[%s238_s0 + $0xe] sm:$0x3]  ;;  %s173_s26 = smov [#allocation2]  }
   0x8   :  { %s133_s27 = sshll.u32 %s173_s26, 4  ;;  %s134_s27 = int_to_ptr.vmem [resolvable:$true] %s133_s27 }
   0x9   :  { %v45_v11 = vrot.slane %v29_v8, %v28_v7  ;;  %v37_v12 = vcombine.high %v29_v8, %v29_v8  ;;  %v52_v13 = vrot.slane %v36_v10, %v28_v7  ;;  %v38_v14 = vcombine.high %v36_v10, %v36_v10  ;;  %s148_s0 = scalar_lea.vmem %s134_s27, 256  ;;  %p153_p1 = scmp.lt.s32.totalorder %s134_s27, %s134_s27 }
   0xa   :  { %p149_p0 = scmp.ne.s32.totalorder %s134_s27, %s148_s0  ;;  %p154_p2 = scmp.lt.s32.totalorder %s148_s0, %s148_s0 }
   0xb   :  { %v74_v16 = vrot.slane %v45_v11, %v73_v9  ;;  %v59_v17 = vrot.slane %v37_v12, %v28_v7  ;;  %v67_v18 = vcombine.high %v45_v11, %v45_v11  ;;  %v90_v20 = vrot.slane %v52_v13, %v73_v9 }
   0xc   :  { %v66_v23 = vrot.slane %v38_v14, %v28_v7  ;;  %v68_v24 = vcombine.high %v52_v13, %v52_v13  ;;  %p155_p3 = por %p154_p2, %p153_p1 }
   0xd   :  { %v111_v25 = vadd.f32 %v74_v16, %v12_v15  ;;  %v78_v26 = vrot.slane %v59_v17, %v73_v9  ;;  %v82_v27 = vrot.slane %v67_v18, %v73_v9  ;;  %v69_v28 = vcombine.high %v59_v17, %v59_v17 }
   0xe   :  { %v115_v32 = vadd.f32 %v90_v20, %v16_v19  ;;  %v94_v33 = vrot.slane %v66_v23, %v73_v9  ;;  %v98_v34 = vrot.slane %v68_v24, %v73_v9  ;;  %v70_v35 = vcombine.high %v66_v23, %v66_v23  ;;  %p156_p4 = pnand %p155_p3, %p149_p0 }
   0xf   :  { %120 = vst.msk [vmem:[#allocation2] sm:$0x3] %vm119_vm0, %v111_v25  ;;  %v112_v36 = vadd.f32 %v78_v26, %v13_v21  ;;  %v113_v37 = vadd.f32 %v82_v27, %v14_v22  ;;  %v86_v38 = vrot.slane %v69_v28, %v73_v9 }
  0x10   :  { %124 = vst.msk [vmem:[#allocation2 + $0x8] sm:$0x3] %vm119_vm0, %v115_v32  ;;  %v116_v40 = vadd.f32 %v94_v33, %v17_v29  ;;  %v117_v41 = vadd.f32 %v98_v34, %v18_v30  ;;  %v102_v42 = vrot.slane %v70_v35, %v73_v9 }
  0x11   :  { %121 = vst.msk [vmem:[#allocation2 + $0x2] sm:$0x3] %vm119_vm0, %v112_v36  ;;  %122 = vst.msk [vmem:[#allocation2 + $0x4] sm:$0x3] %vm119_vm0, %v113_v37  ;;  %v114_v43 = vadd.f32 %v86_v38, %v15_v31 }
  0x12   :  { %125 = vst.msk [vmem:[#allocation2 + $0xa] sm:$0x3] %vm119_vm0, %v116_v40  ;;  %126 = vst.msk [vmem:[#allocation2 + $0xc] sm:$0x3] %vm119_vm0, %v117_v41  ;;  %v118_v44 = vadd.f32 %v102_v42, %v19_v39 }
  0x13   :  { %123 = vst.msk [vmem:[#allocation2 + $0x6] sm:$0x3] %vm119_vm0, %v114_v43 }
  0x14   :  { %127 = vst.msk [vmem:[#allocation2 + $0xe] sm:$0x3] %vm119_vm0, %v118_v44 }
  0x15   :  { %159 = shalt.err (!%p156_p4)
}
  0x16   :  { %s160_s30 = scalar_lea.hbm %s240_s2, 256 }
  0x17   :  { %p161_p5 = scmp.ne.s32.totalorder %s240_s2, %s160_s30  ;;  %p164_p6 = scmp.lt.u32.totalorder %s160_s30, %s240_s2 }
  0x19   :  { %p166_p7 = pnand %p164_p6, %p161_p5 }
  0x1b   :  { %169 = shalt.err (!%p166_p7)
}
  0x1c   :  { %s174_s7 = smov 32   ;;  %s175_s8 = smov 2  }
  0x1d   :  { %139 = dma.vmem_to_hbm [thread:$0]  %s134_s27, 256, %s240_s2, [#allocation3], %s174_s7, %s174_s7, %s175_s8  }
  0x1e   :  { %170 = dma.done.wait [#allocation3], 256  }
  0x1f   :  { %171 = vsyncadd [#allocation3], 4294967040 }
  0x20   :  { %143 = vsyncpa [#allocation3], 1 }

</bundles_post_ra>
